<compile_context>
chip_gen: v6e
topology: v6e:2x2x1
jax: 0.10.0
libtpu: 0.0.40
codegen_flags: <defaults>
</compile_context>

<pallas_src>
import jax
import jax.numpy as jnp
from jax.experimental import pallas as pl
from jax.experimental.pallas import tpu as pltpu


TILE_LANES = 1024          # cameras per block along the lane axis (multiple of 128)
_PALLAS_MIN_CAMERAS = 128  # below this, plain einsum beats kernel launch overhead


def _proj_kernel(k_ref, t_ref, out_ref):
    # k_ref  : (9,  T) -> K[i, m]  stored at row 3*i + m   (camera index on lanes)
    # t_ref  : (12, T) -> T[m, j]  stored at row 4*m + j
    # out_ref: (12, T) -> out[i, j] stored at row 4*i + j
    #   out[i, j, n] = sum_m K[i, m, n] * T[m, j, n]
    # Fully unrolled 12-entry FMA chain; stays on the VPU, lane-dense stores.
    for i in range(3):
        k0 = k_ref[3 * i + 0, :]
        k1 = k_ref[3 * i + 1, :]
        k2 = k_ref[3 * i + 2, :]
        for j in range(4):
            acc = k0 * t_ref[j, :]
            acc = acc + k1 * t_ref[4 + j, :]
            acc = acc + k2 * t_ref[8 + j, :]
            out_ref[4 * i + j, :] = acc


def _batched_k_times_t(k_stack: jax.Array, t3_stack: jax.Array) -> jax.Array:
    """k_stack: (N, 3, 3) f32, t3_stack: (N, 3, 4) f32 -> (N, 3, 4) f32 (Pallas)."""
    n = k_stack.shape[0]

    # Lane tile: multiple of 128, capped at TILE_LANES; pad camera count to it.
    tile = min(TILE_LANES, pl.cdiv(n, 128) * 128)
    n_pad = pl.cdiv(n, tile) * tile
    num_tiles = n_pad // tile

    # Re-layout (plain-XLA glue): flatten matrix dims, camera axis -> lanes.
    k_lanes = k_stack.astype(jnp.float32).reshape(n, 9).T    # (9, N)
    t_lanes = t3_stack.astype(jnp.float32).reshape(n, 12).T  # (12, N)
    pad = n_pad - n
    if pad:
        k_lanes = jnp.pad(k_lanes, ((0, 0), (0, pad)))
        t_lanes = jnp.pad(t_lanes, ((0, 0), (0, pad)))

    out_lanes = pl.pallas_call(
        _proj_kernel,
        out_shape=jax.ShapeDtypeStruct((12, n_pad), jnp.float32),
        grid=(num_tiles,),
        in_specs=[
            pl.BlockSpec((9, tile), lambda i: (0, i)),
            pl.BlockSpec((12, tile), lambda i: (0, i)),
        ],
        out_specs=pl.BlockSpec((12, tile), lambda i: (0, i)),
        compiler_params=pltpu.CompilerParams(
            dimension_semantics=("parallel",),
        ),
    )(k_lanes, t_lanes)

    # Drop lane padding and restore (N, 3, 4): row 4*i + j -> out[n, i, j].
    return out_lanes[:, :n].T.reshape(n, 3, 4)


def stack_transformations(camera_params: dict, new_shape=None, use_pallas=None):
    """JAX/Pallas equivalent of StackTransformations.forward.

    camera_params: {key: {"T_cw": (4,4) array, "K": (3,3) array}}
    Returns (transformation (N,3,4), T_cw (N,4,4), K dict).
    """
    keys = list(camera_params.keys())

    # Stack extrinsics (N, 4, 4) -- mirrors torch.stack(...).to(float32)
    T_cw = jnp.stack(
        [jnp.asarray(camera_params[k]["T_cw"], dtype=jnp.float32) for k in keys]
    )

    # Intrinsics dict (returned as in the reference module).
    K = {k: jnp.asarray(camera_params[k]["K"], dtype=jnp.float32) for k in keys}
    if new_shape is not None:
        # TODO(synk): update_camera_intrinsics is not defined in the reference
        # module's file scope; intrinsic rescaling for new_shape is not implemented.
        pass

    K_stack = jnp.stack([K[k] for k in keys])          # (N, 3, 3)
    T3 = T_cw[:, :3, :]                                # (N, 3, 4)

    n = len(keys)
    if use_pallas is None:
        use_pallas = n >= _PALLAS_MIN_CAMERAS
    if use_pallas:
        transformation = _batched_k_times_t(K_stack, T3)          # Pallas kernel
    else:
        transformation = jnp.einsum("nij,njk->nik", K_stack, T3)  # tiny-N fast path
    return transformation, T_cw, K


if __name__ == "__main__":
    key = jax.random.PRNGKey(0)

    # --- 1) Small module-level test (few cameras, as the PyTorch module is used) ---
    n_cams = 4
    camera_params = {}
    for i in range(n_cams):
        key, k1, k2 = jax.random.split(key, 3)
        T_cw = jax.random.normal(k1, (4, 4), dtype=jnp.float32)
        T_cw = T_cw.at[3, :].set(jnp.array([0.0, 0.0, 0.0, 1.0], dtype=jnp.float32))
        K_i = jnp.array(
            [[100.0 + 10.0 * i, 0.0, 8.0],
             [0.0, 100.0 + 10.0 * i, 8.0],
             [0.0, 0.0, 1.0]],
            dtype=jnp.float32,
        ) + 0.01 * jax.random.normal(k2, (3, 3), dtype=jnp.float32)
        camera_params[f"cam{i}"] = {"T_cw": T_cw, "K": K_i}

    # Force the Pallas path so the kernel is exercised even at small N.
    transformation, T_cw_out, K_out = stack_transformations(camera_params, use_pallas=True)
    jax.block_until_ready((transformation, T_cw_out))

    K_stack = jnp.stack([K_out[k] for k in camera_params.keys()])
    ref = jnp.einsum("nij,njk->nik", K_stack, T_cw_out[:, :3, :])
    assert transformation.shape == (n_cams, 3, 4)
    assert T_cw_out.shape == (n_cams, 4, 4)
    assert jnp.allclose(transformation, ref, atol=1e-4, rtol=1e-4)

    # --- 2) Large-N test to exercise the lane-tiled grid path (multiple tiles) ---
    key, k3, k4 = jax.random.split(key, 3)
    n_big = 2500  # pads to 3072 lanes -> grid of 3 tiles of 1024 cameras
    K_big = jax.random.normal(k3, (n_big, 3, 3), dtype=jnp.float32)
    T_big = jax.random.normal(k4, (n_big, 3, 4), dtype=jnp.float32)
    out_big = _batched_k_times_t(K_big, T_big)
    jax.block_until_ready(out_big)
    ref_big = jnp.einsum("nij,njk->nik", K_big, T_big)
    assert out_big.shape == (n_big, 3, 4)
    assert jnp.allclose(out_big, ref_big, atol=1e-3, rtol=1e-3)

    print("KERNEL_OK")
</pallas_src>

<mosaic_0001>
module attributes {stable_mosaic.version = 11 : i64} {
  func.func @_proj_kernel(%arg0: i32, %arg1: memref<9x128xf32, #tpu.memory_space<vmem>>, %arg2: memref<12x128xf32, #tpu.memory_space<vmem>>, %arg3: memref<12x128xf32, #tpu.memory_space<vmem>>) attributes {dimension_semantics = [#tpu.dimension_semantics<parallel>], iteration_bounds = array<i64: 1>, scalar_prefetch = 0 : i64, scratch_operands = 0 : i64, tpu.core_type = #tpu.core_type<tc>, window_params = [{transform_indices = @transform_0, window_bounds = array<i64: 9, 128>}, {transform_indices = @transform_1, window_bounds = array<i64: 12, 128>}, {transform_indices = @transform_2, window_bounds = array<i64: 12, 128>}]} {
    %c0 = arith.constant 0 : index
    %c0_0 = arith.constant 0 : index
    %0 = vector.load %arg1[%c0, %c0_0] : memref<9x128xf32, #tpu.memory_space<vmem>>, vector<1x128xf32>
    %1 = vector.shape_cast %0 : vector<1x128xf32> to vector<128xf32>
    %c1 = arith.constant 1 : index
    %c0_1 = arith.constant 0 : index
    %2 = vector.load %arg1[%c1, %c0_1] : memref<9x128xf32, #tpu.memory_space<vmem>>, vector<1x128xf32>
    %3 = vector.shape_cast %2 : vector<1x128xf32> to vector<128xf32>
    %c2 = arith.constant 2 : index
    %c0_2 = arith.constant 0 : index
    %4 = vector.load %arg1[%c2, %c0_2] : memref<9x128xf32, #tpu.memory_space<vmem>>, vector<1x128xf32>
    %5 = vector.shape_cast %4 : vector<1x128xf32> to vector<128xf32>
    %c0_3 = arith.constant 0 : index
    %c0_4 = arith.constant 0 : index
    %6 = vector.load %arg2[%c0_3, %c0_4] : memref<12x128xf32, #tpu.memory_space<vmem>>, vector<1x128xf32>
    %7 = vector.shape_cast %6 : vector<1x128xf32> to vector<128xf32>
    %8 = arith.mulf %1, %7 : vector<128xf32>
    %c4 = arith.constant 4 : index
    %c0_5 = arith.constant 0 : index
    %9 = vector.load %arg2[%c4, %c0_5] : memref<12x128xf32, #tpu.memory_space<vmem>>, vector<1x128xf32>
    %10 = vector.shape_cast %9 : vector<1x128xf32> to vector<128xf32>
    %11 = arith.mulf %3, %10 : vector<128xf32>
    %12 = arith.addf %8, %11 : vector<128xf32>
    %c8 = arith.constant 8 : index
    %c0_6 = arith.constant 0 : index
    %13 = vector.load %arg2[%c8, %c0_6] : memref<12x128xf32, #tpu.memory_space<vmem>>, vector<1x128xf32>
    %14 = vector.shape_cast %13 : vector<1x128xf32> to vector<128xf32>
    %15 = arith.mulf %5, %14 : vector<128xf32>
    %16 = arith.addf %12, %15 : vector<128xf32>
    %c0_7 = arith.constant 0 : index
    %c0_8 = arith.constant 0 : index
    %17 = vector.load %arg3[%c0_7, %c0_8] : memref<12x128xf32, #tpu.memory_space<vmem>>, vector<1x128xf32>
    %18 = vector.shape_cast %17 : vector<1x128xf32> to vector<128xf32>
    %19 = vector.shape_cast %16 : vector<128xf32> to vector<1x128xf32>
    tpu.vector_store %arg3[%c0_7, %c0_8], %19 {strides = array<i32>} : memref<12x128xf32, #tpu.memory_space<vmem>>, vector<1x128xf32>,
    %c1_9 = arith.constant 1 : index
    %c0_10 = arith.constant 0 : index
    %20 = vector.load %arg2[%c1_9, %c0_10] : memref<12x128xf32, #tpu.memory_space<vmem>>, vector<1x128xf32>
    %21 = vector.shape_cast %20 : vector<1x128xf32> to vector<128xf32>
    %22 = arith.mulf %1, %21 : vector<128xf32>
    %c5 = arith.constant 5 : index
    %c0_11 = arith.constant 0 : index
    %23 = vector.load %arg2[%c5, %c0_11] : memref<12x128xf32, #tpu.memory_space<vmem>>, vector<1x128xf32>
    %24 = vector.shape_cast %23 : vector<1x128xf32> to vector<128xf32>
    %25 = arith.mulf %3, %24 : vector<128xf32>
    %26 = arith.addf %22, %25 : vector<128xf32>
    %c9 = arith.constant 9 : index
    %c0_12 = arith.constant 0 : index
    %27 = vector.load %arg2[%c9, %c0_12] : memref<12x128xf32, #tpu.memory_space<vmem>>, vector<1x128xf32>
    %28 = vector.shape_cast %27 : vector<1x128xf32> to vector<128xf32>
    %29 = arith.mulf %5, %28 : vector<128xf32>
    %30 = arith.addf %26, %29 : vector<128xf32>
    %c1_13 = arith.constant 1 : index
    %c0_14 = arith.constant 0 : index
    %31 = vector.load %arg3[%c1_13, %c0_14] : memref<12x128xf32, #tpu.memory_space<vmem>>, vector<1x128xf32>
    %32 = vector.shape_cast %31 : vector<1x128xf32> to vector<128xf32>
    %33 = vector.shape_cast %30 : vector<128xf32> to vector<1x128xf32>
    tpu.vector_store %arg3[%c1_13, %c0_14], %33 {strides = array<i32>} : memref<12x128xf32, #tpu.memory_space<vmem>>, vector<1x128xf32>,
    %c2_15 = arith.constant 2 : index
    %c0_16 = arith.constant 0 : index
    %34 = vector.load %arg2[%c2_15, %c0_16] : memref<12x128xf32, #tpu.memory_space<vmem>>, vector<1x128xf32>
    %35 = vector.shape_cast %34 : vector<1x128xf32> to vector<128xf32>
    %36 = arith.mulf %1, %35 : vector<128xf32>
    %c6 = arith.constant 6 : index
    %c0_17 = arith.constant 0 : index
    %37 = vector.load %arg2[%c6, %c0_17] : memref<12x128xf32, #tpu.memory_space<vmem>>, vector<1x128xf32>
    %38 = vector.shape_cast %37 : vector<1x128xf32> to vector<128xf32>
    %39 = arith.mulf %3, %38 : vector<128xf32>
    %40 = arith.addf %36, %39 : vector<128xf32>
    %c10 = arith.constant 10 : index
    %c0_18 = arith.constant 0 : index
    %41 = vector.load %arg2[%c10, %c0_18] : memref<12x128xf32, #tpu.memory_space<vmem>>, vector<1x128xf32>
    %42 = vector.shape_cast %41 : vector<1x128xf32> to vector<128xf32>
    %43 = arith.mulf %5, %42 : vector<128xf32>
    %44 = arith.addf %40, %43 : vector<128xf32>
    %c2_19 = arith.constant 2 : index
    %c0_20 = arith.constant 0 : index
    %45 = vector.load %arg3[%c2_19, %c0_20] : memref<12x128xf32, #tpu.memory_space<vmem>>, vector<1x128xf32>
    %46 = vector.shape_cast %45 : vector<1x128xf32> to vector<128xf32>
    %47 = vector.shape_cast %44 : vector<128xf32> to vector<1x128xf32>
    tpu.vector_store %arg3[%c2_19, %c0_20], %47 {strides = array<i32>} : memref<12x128xf32, #tpu.memory_space<vmem>>, vector<1x128xf32>,
    %c3 = arith.constant 3 : index
    %c0_21 = arith.constant 0 : index
    %48 = vector.load %arg2[%c3, %c0_21] : memref<12x128xf32, #tpu.memory_space<vmem>>, vector<1x128xf32>
    %49 = vector.shape_cast %48 : vector<1x128xf32> to vector<128xf32>
    %50 = arith.mulf %1, %49 : vector<128xf32>
    %c7 = arith.constant 7 : index
    %c0_22 = arith.constant 0 : index
    %51 = vector.load %arg2[%c7, %c0_22] : memref<12x128xf32, #tpu.memory_space<vmem>>, vector<1x128xf32>
    %52 = vector.shape_cast %51 : vector<1x128xf32> to vector<128xf32>
    %53 = arith.mulf %3, %52 : vector<128xf32>
    %54 = arith.addf %50, %53 : vector<128xf32>
    %c11 = arith.constant 11 : index
    %c0_23 = arith.constant 0 : index
    %55 = vector.load %arg2[%c11, %c0_23] : memref<12x128xf32, #tpu.memory_space<vmem>>, vector<1x128xf32>
    %56 = vector.shape_cast %55 : vector<1x128xf32> to vector<128xf32>
    %57 = arith.mulf %5, %56 : vector<128xf32>
    %58 = arith.addf %54, %57 : vector<128xf32>
    %c3_24 = arith.constant 3 : index
    %c0_25 = arith.constant 0 : index
    %59 = vector.load %arg3[%c3_24, %c0_25] : memref<12x128xf32, #tpu.memory_space<vmem>>, vector<1x128xf32>
    %60 = vector.shape_cast %59 : vector<1x128xf32> to vector<128xf32>
    %61 = vector.shape_cast %58 : vector<128xf32> to vector<1x128xf32>
    tpu.vector_store %arg3[%c3_24, %c0_25], %61 {strides = array<i32>} : memref<12x128xf32, #tpu.memory_space<vmem>>, vector<1x128xf32>,
    %c3_26 = arith.constant 3 : index
    %c0_27 = arith.constant 0 : index
    %62 = vector.load %arg1[%c3_26, %c0_27] : memref<9x128xf32, #tpu.memory_space<vmem>>, vector<1x128xf32>
    %63 = vector.shape_cast %62 : vector<1x128xf32> to vector<128xf32>
    %c4_28 = arith.constant 4 : index
    %c0_29 = arith.constant 0 : index
    %64 = vector.load %arg1[%c4_28, %c0_29] : memref<9x128xf32, #tpu.memory_space<vmem>>, vector<1x128xf32>
    %65 = vector.shape_cast %64 : vector<1x128xf32> to vector<128xf32>
    %c5_30 = arith.constant 5 : index
    %c0_31 = arith.constant 0 : index
    %66 = vector.load %arg1[%c5_30, %c0_31] : memref<9x128xf32, #tpu.memory_space<vmem>>, vector<1x128xf32>
    %67 = vector.shape_cast %66 : vector<1x128xf32> to vector<128xf32>
    %c0_32 = arith.constant 0 : index
    %c0_33 = arith.constant 0 : index
    %68 = vector.load %arg2[%c0_32, %c0_33] : memref<12x128xf32, #tpu.memory_space<vmem>>, vector<1x128xf32>
    %69 = vector.shape_cast %68 : vector<1x128xf32> to vector<128xf32>
    %70 = arith.mulf %63, %69 : vector<128xf32>
    %c4_34 = arith.constant 4 : index
    %c0_35 = arith.constant 0 : index
    %71 = vector.load %arg2[%c4_34, %c0_35] : memref<12x128xf32, #tpu.memory_space<vmem>>, vector<1x128xf32>
    %72 = vector.shape_cast %71 : vector<1x128xf32> to vector<128xf32>
    %73 = arith.mulf %65, %72 : vector<128xf32>
    %74 = arith.addf %70, %73 : vector<128xf32>
    %c8_36 = arith.constant 8 : index
    %c0_37 = arith.constant 0 : index
    %75 = vector.load %arg2[%c8_36, %c0_37] : memref<12x128xf32, #tpu.memory_space<vmem>>, vector<1x128xf32>
    %76 = vector.shape_cast %75 : vector<1x128xf32> to vector<128xf32>
    %77 = arith.mulf %67, %76 : vector<128xf32>
    %78 = arith.addf %74, %77 : vector<128xf32>
    %c4_38 = arith.constant 4 : index
    %c0_39 = arith.constant 0 : index
    %79 = vector.load %arg3[%c4_38, %c0_39] : memref<12x128xf32, #tpu.memory_space<vmem>>, vector<1x128xf32>
    %80 = vector.shape_cast %79 : vector<1x128xf32> to vector<128xf32>
    %81 = vector.shape_cast %78 : vector<128xf32> to vector<1x128xf32>
    tpu.vector_store %arg3[%c4_38, %c0_39], %81 {strides = array<i32>} : memref<12x128xf32, #tpu.memory_space<vmem>>, vector<1x128xf32>,
    %c1_40 = arith.constant 1 : index
    %c0_41 = arith.constant 0 : index
    %82 = vector.load %arg2[%c1_40, %c0_41] : memref<12x128xf32, #tpu.memory_space<vmem>>, vector<1x128xf32>
    %83 = vector.shape_cast %82 : vector<1x128xf32> to vector<128xf32>
    %84 = arith.mulf %63, %83 : vector<128xf32>
    %c5_42 = arith.constant 5 : index
    %c0_43 = arith.constant 0 : index
    %85 = vector.load %arg2[%c5_42, %c0_43] : memref<12x128xf32, #tpu.memory_space<vmem>>, vector<1x128xf32>
    %86 = vector.shape_cast %85 : vector<1x128xf32> to vector<128xf32>
    %87 = arith.mulf %65, %86 : vector<128xf32>
    %88 = arith.addf %84, %87 : vector<128xf32>
    %c9_44 = arith.constant 9 : index
    %c0_45 = arith.constant 0 : index
    %89 = vector.load %arg2[%c9_44, %c0_45] : memref<12x128xf32, #tpu.memory_space<vmem>>, vector<1x128xf32>
    %90 = vector.shape_cast %89 : vector<1x128xf32> to vector<128xf32>
    %91 = arith.mulf %67, %90 : vector<128xf32>
    %92 = arith.addf %88, %91 : vector<128xf32>
    %c5_46 = arith.constant 5 : index
    %c0_47 = arith.constant 0 : index
    %93 = vector.load %arg3[%c5_46, %c0_47] : memref<12x128xf32, #tpu.memory_space<vmem>>, vector<1x128xf32>
    %94 = vector.shape_cast %93 : vector<1x128xf32> to vector<128xf32>
    %95 = vector.shape_cast %92 : vector<128xf32> to vector<1x128xf32>
    tpu.vector_store %arg3[%c5_46, %c0_47], %95 {strides = array<i32>} : memref<12x128xf32, #tpu.memory_space<vmem>>, vector<1x128xf32>,
    %c2_48 = arith.constant 2 : index
    %c0_49 = arith.constant 0 : index
    %96 = vector.load %arg2[%c2_48, %c0_49] : memref<12x128xf32, #tpu.memory_space<vmem>>, vector<1x128xf32>
    %97 = vector.shape_cast %96 : vector<1x128xf32> to vector<128xf32>
    %98 = arith.mulf %63, %97 : vector<128xf32>
    %c6_50 = arith.constant 6 : index
    %c0_51 = arith.constant 0 : index
    %99 = vector.load %arg2[%c6_50, %c0_51] : memref<12x128xf32, #tpu.memory_space<vmem>>, vector<1x128xf32>
    %100 = vector.shape_cast %99 : vector<1x128xf32> to vector<128xf32>
    %101 = arith.mulf %65, %100 : vector<128xf32>
    %102 = arith.addf %98, %101 : vector<128xf32>
    %c10_52 = arith.constant 10 : index
    %c0_53 = arith.constant 0 : index
    %103 = vector.load %arg2[%c10_52, %c0_53] : memref<12x128xf32, #tpu.memory_space<vmem>>, vector<1x128xf32>
    %104 = vector.shape_cast %103 : vector<1x128xf32> to vector<128xf32>
    %105 = arith.mulf %67, %104 : vector<128xf32>
    %106 = arith.addf %102, %105 : vector<128xf32>
    %c6_54 = arith.constant 6 : index
    %c0_55 = arith.constant 0 : index
    %107 = vector.load %arg3[%c6_54, %c0_55] : memref<12x128xf32, #tpu.memory_space<vmem>>, vector<1x128xf32>
    %108 = vector.shape_cast %107 : vector<1x128xf32> to vector<128xf32>
    %109 = vector.shape_cast %106 : vector<128xf32> to vector<1x128xf32>
    tpu.vector_store %arg3[%c6_54, %c0_55], %109 {strides = array<i32>} : memref<12x128xf32, #tpu.memory_space<vmem>>, vector<1x128xf32>,
    %c3_56 = arith.constant 3 : index
    %c0_57 = arith.constant 0 : index
    %110 = vector.load %arg2[%c3_56, %c0_57] : memref<12x128xf32, #tpu.memory_space<vmem>>, vector<1x128xf32>
    %111 = vector.shape_cast %110 : vector<1x128xf32> to vector<128xf32>
    %112 = arith.mulf %63, %111 : vector<128xf32>
    %c7_58 = arith.constant 7 : index
    %c0_59 = arith.constant 0 : index
    %113 = vector.load %arg2[%c7_58, %c0_59] : memref<12x128xf32, #tpu.memory_space<vmem>>, vector<1x128xf32>
    %114 = vector.shape_cast %113 : vector<1x128xf32> to vector<128xf32>
    %115 = arith.mulf %65, %114 : vector<128xf32>
    %116 = arith.addf %112, %115 : vector<128xf32>
    %c11_60 = arith.constant 11 : index
    %c0_61 = arith.constant 0 : index
    %117 = vector.load %arg2[%c11_60, %c0_61] : memref<12x128xf32, #tpu.memory_space<vmem>>, vector<1x128xf32>
    %118 = vector.shape_cast %117 : vector<1x128xf32> to vector<128xf32>
    %119 = arith.mulf %67, %118 : vector<128xf32>
    %120 = arith.addf %116, %119 : vector<128xf32>
    %c7_62 = arith.constant 7 : index
    %c0_63 = arith.constant 0 : index
    %121 = vector.load %arg3[%c7_62, %c0_63] : memref<12x128xf32, #tpu.memory_space<vmem>>, vector<1x128xf32>
    %122 = vector.shape_cast %121 : vector<1x128xf32> to vector<128xf32>
    %123 = vector.shape_cast %120 : vector<128xf32> to vector<1x128xf32>
    tpu.vector_store %arg3[%c7_62, %c0_63], %123 {strides = array<i32>} : memref<12x128xf32, #tpu.memory_space<vmem>>, vector<1x128xf32>,
    %c6_64 = arith.constant 6 : index
    %c0_65 = arith.constant 0 : index
    %124 = vector.load %arg1[%c6_64, %c0_65] : memref<9x128xf32, #tpu.memory_space<vmem>>, vector<1x128xf32>
    %125 = vector.shape_cast %124 : vector<1x128xf32> to vector<128xf32>
    %c7_66 = arith.constant 7 : index
    %c0_67 = arith.constant 0 : index
    %126 = vector.load %arg1[%c7_66, %c0_67] : memref<9x128xf32, #tpu.memory_space<vmem>>, vector<1x128xf32>
    %127 = vector.shape_cast %126 : vector<1x128xf32> to vector<128xf32>
    %c8_68 = arith.constant 8 : index
    %c0_69 = arith.constant 0 : index
    %128 = vector.load %arg1[%c8_68, %c0_69] : memref<9x128xf32, #tpu.memory_space<vmem>>, vector<1x128xf32>
    %129 = vector.shape_cast %128 : vector<1x128xf32> to vector<128xf32>
    %c0_70 = arith.constant 0 : index
    %c0_71 = arith.constant 0 : index
    %130 = vector.load %arg2[%c0_70, %c0_71] : memref<12x128xf32, #tpu.memory_space<vmem>>, vector<1x128xf32>
    %131 = vector.shape_cast %130 : vector<1x128xf32> to vector<128xf32>
    %132 = arith.mulf %125, %131 : vector<128xf32>
    %c4_72 = arith.constant 4 : index
    %c0_73 = arith.constant 0 : index
    %133 = vector.load %arg2[%c4_72, %c0_73] : memref<12x128xf32, #tpu.memory_space<vmem>>, vector<1x128xf32>
    %134 = vector.shape_cast %133 : vector<1x128xf32> to vector<128xf32>
    %135 = arith.mulf %127, %134 : vector<128xf32>
    %136 = arith.addf %132, %135 : vector<128xf32>
    %c8_74 = arith.constant 8 : index
    %c0_75 = arith.constant 0 : index
    %137 = vector.load %arg2[%c8_74, %c0_75] : memref<12x128xf32, #tpu.memory_space<vmem>>, vector<1x128xf32>
    %138 = vector.shape_cast %137 : vector<1x128xf32> to vector<128xf32>
    %139 = arith.mulf %129, %138 : vector<128xf32>
    %140 = arith.addf %136, %139 : vector<128xf32>
    %c8_76 = arith.constant 8 : index
    %c0_77 = arith.constant 0 : index
    %141 = vector.load %arg3[%c8_76, %c0_77] : memref<12x128xf32, #tpu.memory_space<vmem>>, vector<1x128xf32>
    %142 = vector.shape_cast %141 : vector<1x128xf32> to vector<128xf32>
    %143 = vector.shape_cast %140 : vector<128xf32> to vector<1x128xf32>
    tpu.vector_store %arg3[%c8_76, %c0_77], %143 {strides = array<i32>} : memref<12x128xf32, #tpu.memory_space<vmem>>, vector<1x128xf32>,
    %c1_78 = arith.constant 1 : index
    %c0_79 = arith.constant 0 : index
    %144 = vector.load %arg2[%c1_78, %c0_79] : memref<12x128xf32, #tpu.memory_space<vmem>>, vector<1x128xf32>
    %145 = vector.shape_cast %144 : vector<1x128xf32> to vector<128xf32>
    %146 = arith.mulf %125, %145 : vector<128xf32>
    %c5_80 = arith.constant 5 : index
    %c0_81 = arith.constant 0 : index
    %147 = vector.load %arg2[%c5_80, %c0_81] : memref<12x128xf32, #tpu.memory_space<vmem>>, vector<1x128xf32>
    %148 = vector.shape_cast %147 : vector<1x128xf32> to vector<128xf32>
    %149 = arith.mulf %127, %148 : vector<128xf32>
    %150 = arith.addf %146, %149 : vector<128xf32>
    %c9_82 = arith.constant 9 : index
    %c0_83 = arith.constant 0 : index
    %151 = vector.load %arg2[%c9_82, %c0_83] : memref<12x128xf32, #tpu.memory_space<vmem>>, vector<1x128xf32>
    %152 = vector.shape_cast %151 : vector<1x128xf32> to vector<128xf32>
    %153 = arith.mulf %129, %152 : vector<128xf32>
    %154 = arith.addf %150, %153 : vector<128xf32>
    %c9_84 = arith.constant 9 : index
    %c0_85 = arith.constant 0 : index
    %155 = vector.load %arg3[%c9_84, %c0_85] : memref<12x128xf32, #tpu.memory_space<vmem>>, vector<1x128xf32>
    %156 = vector.shape_cast %155 : vector<1x128xf32> to vector<128xf32>
    %157 = vector.shape_cast %154 : vector<128xf32> to vector<1x128xf32>
    tpu.vector_store %arg3[%c9_84, %c0_85], %157 {strides = array<i32>} : memref<12x128xf32, #tpu.memory_space<vmem>>, vector<1x128xf32>,
    %c2_86 = arith.constant 2 : index
    %c0_87 = arith.constant 0 : index
    %158 = vector.load %arg2[%c2_86, %c0_87] : memref<12x128xf32, #tpu.memory_space<vmem>>, vector<1x128xf32>
    %159 = vector.shape_cast %158 : vector<1x128xf32> to vector<128xf32>
    %160 = arith.mulf %125, %159 : vector<128xf32>
    %c6_88 = arith.constant 6 : index
    %c0_89 = arith.constant 0 : index
    %161 = vector.load %arg2[%c6_88, %c0_89] : memref<12x128xf32, #tpu.memory_space<vmem>>, vector<1x128xf32>
    %162 = vector.shape_cast %161 : vector<1x128xf32> to vector<128xf32>
    %163 = arith.mulf %127, %162 : vector<128xf32>
    %164 = arith.addf %160, %163 : vector<128xf32>
    %c10_90 = arith.constant 10 : index
    %c0_91 = arith.constant 0 : index
    %165 = vector.load %arg2[%c10_90, %c0_91] : memref<12x128xf32, #tpu.memory_space<vmem>>, vector<1x128xf32>
    %166 = vector.shape_cast %165 : vector<1x128xf32> to vector<128xf32>
    %167 = arith.mulf %129, %166 : vector<128xf32>
    %168 = arith.addf %164, %167 : vector<128xf32>
    %c10_92 = arith.constant 10 : index
    %c0_93 = arith.constant 0 : index
    %169 = vector.load %arg3[%c10_92, %c0_93] : memref<12x128xf32, #tpu.memory_space<vmem>>, vector<1x128xf32>
    %170 = vector.shape_cast %169 : vector<1x128xf32> to vector<128xf32>
    %171 = vector.shape_cast %168 : vector<128xf32> to vector<1x128xf32>
    tpu.vector_store %arg3[%c10_92, %c0_93], %171 {strides = array<i32>} : memref<12x128xf32, #tpu.memory_space<vmem>>, vector<1x128xf32>,
    %c3_94 = arith.constant 3 : index
    %c0_95 = arith.constant 0 : index
    %172 = vector.load %arg2[%c3_94, %c0_95] : memref<12x128xf32, #tpu.memory_space<vmem>>, vector<1x128xf32>
    %173 = vector.shape_cast %172 : vector<1x128xf32> to vector<128xf32>
    %174 = arith.mulf %125, %173 : vector<128xf32>
    %c7_96 = arith.constant 7 : index
    %c0_97 = arith.constant 0 : index
    %175 = vector.load %arg2[%c7_96, %c0_97] : memref<12x128xf32, #tpu.memory_space<vmem>>, vector<1x128xf32>
    %176 = vector.shape_cast %175 : vector<1x128xf32> to vector<128xf32>
    %177 = arith.mulf %127, %176 : vector<128xf32>
    %178 = arith.addf %174, %177 : vector<128xf32>
    %c11_98 = arith.constant 11 : index
    %c0_99 = arith.constant 0 : index
    %179 = vector.load %arg2[%c11_98, %c0_99] : memref<12x128xf32, #tpu.memory_space<vmem>>, vector<1x128xf32>
    %180 = vector.shape_cast %179 : vector<1x128xf32> to vector<128xf32>
    %181 = arith.mulf %129, %180 : vector<128xf32>
    %182 = arith.addf %178, %181 : vector<128xf32>
    %c11_100 = arith.constant 11 : index
    %c0_101 = arith.constant 0 : index
    %183 = vector.load %arg3[%c11_100, %c0_101] : memref<12x128xf32, #tpu.memory_space<vmem>>, vector<1x128xf32>
    %184 = vector.shape_cast %183 : vector<1x128xf32> to vector<128xf32>
    %185 = vector.shape_cast %182 : vector<128xf32> to vector<1x128xf32>
    tpu.vector_store %arg3[%c11_100, %c0_101], %185 {strides = array<i32>} : memref<12x128xf32, #tpu.memory_space<vmem>>, vector<1x128xf32>,
    return
  }
  func.func @transform_0(%arg0: i32) -> (i32, i32) {
    %c0_i32 = arith.constant 0 : i32
    %c0_i32_0 = arith.constant 0 : i32
    return %c0_i32, %arg0 : i32, i32
  }
  func.func @transform_1(%arg0: i32) -> (i32, i32) {
    %c0_i32 = arith.constant 0 : i32
    %c0_i32_0 = arith.constant 0 : i32
    return %c0_i32, %arg0 : i32, i32
  }
  func.func @transform_2(%arg0: i32) -> (i32, i32) {
    %c0_i32 = arith.constant 0 : i32
    %c0_i32_0 = arith.constant 0 : i32
    return %c0_i32, %arg0 : i32, i32
  }
}

</mosaic_0001>

<bundles_post_ra>
// kernel: tpu_custom_call.1
= control target key start
LH: loop header
LB: loop body
LE: loop exit
PB: predicated region body
PF: predicated region fallthrough
CT: control target
= control target key end

     0   :  { %7 = vsyncpa [#allocation3], 0  ;;  %s284_s0 = inlined_call_operand.hbm [shape: f32[9,128], index: 0, kind: input, shape index: {}]   ;;  %s285_s1 = inlined_call_operand.hbm [shape: f32[12,128], index: 1, kind: input, shape index: {}]   ;;  %s286_s2 = inlined_call_operand.hbm [shape: f32[12,128], index: 2, kind: output, shape index: {}]  }
   0x1   :  { %8 = vsyncpa [#allocation6], 0 }
   0x2   :  { %9 = vsyncpa [#allocation4], 0  ;;  %s246_s9 = smov [#allocation2]  }
   0x3   :  { %s15_s10 = sshll.u32 %s246_s9, 4  ;;  %s16_s10 = int_to_ptr.vmem [resolvable:$true] %s15_s10 }
   0x4   :  { %s188_s11 = scalar_lea.vmem %s16_s10, 256  ;;  %p193_p1 = scmp.lt.s32.totalorder %s16_s10, %s16_s10 }
   0x5   :  { %p189_p0 = scmp.ne.s32.totalorder %s16_s10, %s188_s11  ;;  %p194_p2 = scmp.lt.s32.totalorder %s188_s11, %s188_s11 }
   0x7   :  { %p195_p3 = por %p194_p2, %p193_p1 }
   0x9   :  { %p196_p4 = pnand %p195_p3, %p189_p0 }
   0xb   :  { %199 = shalt.err (!%p196_p4)
}
   0xc   :  { %s247_s12 = smov 128   ;;  %s248_s13 = smov 8  }
   0xd   :  { %21 = dma.hbm_to_vmem [thread:$0]  %s284_s0, 256, %s16_s10, [#allocation3], %s247_s12, %s247_s12, %s248_s13  }
   0xe   :  { %s249_s16 = smov [#allocation5]  }
   0xf   :  { %s27_s17 = sshll.u32 %s249_s16, 4  ;;  %s28_s17 = int_to_ptr.vmem [resolvable:$true] %s27_s17 }
  0x10   :  { %s208_s18 = scalar_lea.vmem %s28_s17, 256  ;;  %p213_p6 = scmp.lt.s32.totalorder %s28_s17, %s28_s17 }
  0x11   :  { %p209_p5 = scmp.ne.s32.totalorder %s28_s17, %s208_s18  ;;  %p214_p7 = scmp.lt.s32.totalorder %s208_s18, %s208_s18 }
  0x13   :  { %p215_p8 = por %p214_p7, %p213_p6 }
  0x15   :  { %p216_p9 = pnand %p215_p8, %p209_p5 }
  0x17   :  { %219 = shalt.err (!%p216_p9)
}
  0x18   :  { %33 = dma.hbm_to_vmem [thread:$0]  %s285_s1, 256, %s28_s17, [#allocation6], %s247_s12, %s247_s12, %s248_s13  }
  0x19   :  { %240 = dma.done.wait [#allocation3], 256  }
  0x1a   :  { %241 = vsyncadd [#allocation3], 4294967040 }
  0x1b   :  { %242 = dma.done.wait [#allocation6], 256  }
  0x1c   :  { %243 = vsyncadd [#allocation6], 4294967040  ;;  %v40_v0 = vld [vmem:[#allocation2] sm:$0x1]  ;;  %v41_v1 = vld [vmem:[#allocation2 + $0x1] sm:$0x1] }
  0x1d   :  { %v42_v2 = vld [vmem:[#allocation2 + $0x2] sm:$0x1]  ;;  %v43_v3 = vld [vmem:[#allocation5] sm:$0x1]  ;;  %v45_v4 = vld [vmem:[#allocation5 + $0x4] sm:$0x1] }
  0x1e   :  { %v48_v5 = vld [vmem:[#allocation5 + $0x8] sm:$0x1]  ;;  %v44_v6 = vmul.f32 %v43_v3, %v40_v0  ;;  %v46_v7 = vmul.f32 %v45_v4, %v41_v1  ;;  %v52_v9 = vld [vmem:[#allocation5 + $0x1] sm:$0x1]  ;;  %v54_v10 = vld [vmem:[#allocation5 + $0x5] sm:$0x1] }
  0x1f   :  { %v49_v8 = vmul.f32 %v48_v5, %v42_v2  ;;  %v57_v11 = vld [vmem:[#allocation5 + $0x9] sm:$0x1]  ;;  %v53_v12 = vmul.f32 %v52_v9, %v40_v0  ;;  %v55_v13 = vmul.f32 %v54_v10, %v41_v1  ;;  %v61_v15 = vld [vmem:[#allocation5 + $0x2] sm:$0x1]  ;;  %v63_v16 = vld [vmem:[#allocation5 + $0x6] sm:$0x1] }
  0x20   :  { %v58_v14 = vmul.f32 %v57_v11, %v42_v2  ;;  %v66_v17 = vld [vmem:[#allocation5 + $0xa] sm:$0x1]  ;;  %v47_v18 = vadd.f32 %v46_v7, %v44_v6  ;;  %v62_v19 = vmul.f32 %v61_v15, %v40_v0  ;;  %v64_v20 = vmul.f32 %v63_v16, %v41_v1  ;;  %v70_v22 = vld [vmem:[#allocation5 + $0x3] sm:$0x1]  ;;  %v72_v23 = vld [vmem:[#allocation5 + $0x7] sm:$0x1] }
  0x21   :  { %v67_v21 = vmul.f32 %v66_v17, %v42_v2  ;;  %v75_v24 = vld [vmem:[#allocation5 + $0xb] sm:$0x1]  ;;  %v56_v25 = vadd.f32 %v55_v13, %v53_v12  ;;  %v71_v26 = vmul.f32 %v70_v22, %v40_v0  ;;  %v73_v27 = vmul.f32 %v72_v23, %v41_v1  ;;  %v79_v29 = vld [vmem:[#allocation2 + $0x3] sm:$0x1]  ;;  %v80_v30 = vld [vmem:[#allocation2 + $0x4] sm:$0x1] }
  0x22   :  { %v76_v28 = vmul.f32 %v75_v24, %v42_v2  ;;  %v81_v31 = vld [vmem:[#allocation2 + $0x5] sm:$0x1]  ;;  %v50_v32 = vadd.f32 %v49_v8, %v47_v18  ;;  %v65_v33 = vadd.f32 %v64_v20, %v62_v19  ;;  %v82_v34 = vld [vmem:[#allocation5] sm:$0x1]  ;;  %v84_v35 = vld [vmem:[#allocation5 + $0x4] sm:$0x1] }
  0x23   :  { %v87_v36 = vld [vmem:[#allocation5 + $0x8] sm:$0x1]  ;;  %v59_v37 = vadd.f32 %v58_v14, %v56_v25  ;;  %v74_v38 = vadd.f32 %v73_v27, %v71_v26  ;;  %v83_v39 = vmul.f32 %v82_v34, %v79_v29  ;;  %v85_v40 = vmul.f32 %v84_v35, %v80_v30  ;;  %v91_v41 = vld [vmem:[#allocation5 + $0x1] sm:$0x1]  ;;  %v93_v42 = vld [vmem:[#allocation5 + $0x5] sm:$0x1] }
  0x24   :  { %v96_v43 = vld [vmem:[#allocation5 + $0x9] sm:$0x1]  ;;  %51 = vst [vmem:[#allocation7] sm:$0x1] %v50_v32  ;;  %v68_v44 = vadd.f32 %v67_v21, %v65_v33  ;;  %v88_v45 = vmul.f32 %v87_v36, %v81_v31  ;;  %v92_v46 = vmul.f32 %v91_v41, %v79_v29  ;;  %v94_v47 = vmul.f32 %v93_v42, %v80_v30  ;;  %v100_v48 = vld [vmem:[#allocation5 + $0x2] sm:$0x1] }
  0x25   :  { %v102_v49 = vld [vmem:[#allocation5 + $0x6] sm:$0x1]  ;;  %v105_v50 = vld [vmem:[#allocation5 + $0xa] sm:$0x1]  ;;  %60 = vst [vmem:[#allocation7 + $0x1] sm:$0x1] %v59_v37  ;;  %v77_v51 = vadd.f32 %v76_v28, %v74_v38  ;;  %v86_v52 = vadd.f32 %v85_v40, %v83_v39  ;;  %v97_v53 = vmul.f32 %v96_v43, %v81_v31  ;;  %v101_v54 = vmul.f32 %v100_v48, %v79_v29 }
  0x26   :  { %v109_v55 = vld [vmem:[#allocation5 + $0x3] sm:$0x1]  ;;  %v111_v56 = vld [vmem:[#allocation5 + $0x7] sm:$0x1]  ;;  %v114_v57 = vld [vmem:[#allocation5 + $0xb] sm:$0x1]  ;;  %v95_v58 = vadd.f32 %v94_v47, %v92_v46  ;;  %v103_v59 = vmul.f32 %v102_v49, %v80_v30  ;;  %v106_v60 = vmul.f32 %v105_v50, %v81_v31 }
  0x27   :  { %69 = vst [vmem:[#allocation7 + $0x2] sm:$0x1] %v68_v44  ;;  %v110_v61 = vmul.f32 %v109_v55, %v79_v29  ;;  %v118_v62 = vld [vmem:[#allocation2 + $0x6] sm:$0x1]  ;;  %v119_v63 = vld [vmem:[#allocation2 + $0x7] sm:$0x1]  ;;  %v89_v1 = vadd.f32 %v88_v45, %v86_v52  ;;  %v112_v2 = vmul.f32 %v111_v56, %v80_v30  ;;  %v115_v3 = vmul.f32 %v114_v57, %v81_v31 }
  0x28   :  { %v120_v0 = vld [vmem:[#allocation2 + $0x8] sm:$0x1]  ;;  %78 = vst [vmem:[#allocation7 + $0x3] sm:$0x1] %v77_v51  ;;  %v121_v4 = vld [vmem:[#allocation5] sm:$0x1]  ;;  %v98_v7 = vadd.f32 %v97_v53, %v95_v58  ;;  %v104_v8 = vadd.f32 %v103_v59, %v101_v54 }
  0x29   :  { %v123_v5 = vld [vmem:[#allocation5 + $0x4] sm:$0x1]  ;;  %v126_v6 = vld [vmem:[#allocation5 + $0x8] sm:$0x1]  ;;  %v122_v9 = vmul.f32 %v121_v4, %v118_v62  ;;  %v130_v11 = vld [vmem:[#allocation5 + $0x1] sm:$0x1]  ;;  %v113_v14 = vadd.f32 %v112_v2, %v110_v61 }
  0x2a   :  { %v124_v10 = vmul.f32 %v123_v5, %v119_v63  ;;  %v132_v12 = vld [vmem:[#allocation5 + $0x5] sm:$0x1]  ;;  %v135_v13 = vld [vmem:[#allocation5 + $0x9] sm:$0x1]  ;;  %90 = vst [vmem:[#allocation7 + $0x4] sm:$0x1] %v89_v1  ;;  %v127_v15 = vmul.f32 %v126_v6, %v120_v0  ;;  %v131_v16 = vmul.f32 %v130_v11, %v118_v62  ;;  %v107_v21 = vadd.f32 %v106_v60, %v104_v8 }
  0x2b   :  { %v133_v17 = vmul.f32 %v132_v12, %v119_v63  ;;  %v139_v18 = vld [vmem:[#allocation5 + $0x2] sm:$0x1]  ;;  %v141_v19 = vld [vmem:[#allocation5 + $0x6] sm:$0x1]  ;;  %v144_v20 = vld [vmem:[#allocation5 + $0xa] sm:$0x1]  ;;  %v136_v23 = vmul.f32 %v135_v13, %v120_v0  ;;  %v116_v28 = vadd.f32 %v115_v3, %v113_v14 }
  0x2c   :  { %99 = vst [vmem:[#allocation7 + $0x5] sm:$0x1] %v98_v7  ;;  %v125_v22 = vadd.f32 %v124_v10, %v122_v9  ;;  %v140_v24 = vmul.f32 %v139_v18, %v118_v62  ;;  %v148_v25 = vld [vmem:[#allocation5 + $0x3] sm:$0x1]  ;;  %v150_v26 = vld [vmem:[#allocation5 + $0x7] sm:$0x1]  ;;  %v142_v30 = vmul.f32 %v141_v19, %v119_v63  ;;  %v145_v31 = vmul.f32 %v144_v20, %v120_v0 }
  0x2d   :  { %v153_v27 = vld [vmem:[#allocation5 + $0xb] sm:$0x1]  ;;  %v134_v29 = vadd.f32 %v133_v17, %v131_v16  ;;  %108 = vst [vmem:[#allocation7 + $0x6] sm:$0x1] %v107_v21  ;;  %v149_v33 = vmul.f32 %v148_v25, %v118_v62  ;;  %v151_v34 = vmul.f32 %v150_v26, %v119_v63  ;;  %117 = vst [vmem:[#allocation7 + $0x7] sm:$0x1] %v116_v28 }
  0x2e   :  { %v128_v32 = vadd.f32 %v127_v15, %v125_v22  ;;  %v154_v35 = vmul.f32 %v153_v27, %v120_v0  ;;  %v143_v37 = vadd.f32 %v142_v30, %v140_v24  ;;  %s250_s0 = smov [#allocation7]  }
  0x2f   :  { %v137_v36 = vadd.f32 %v136_v23, %v134_v29  ;;  %s162_s1 = sshll.u32 %s250_s0, 4  ;;  %v152_v38 = vadd.f32 %v151_v34, %v149_v33  ;;  %s163_s1 = int_to_ptr.vmem [resolvable:$true] %s162_s1 }
  0x30   :  { %129 = vst [vmem:[#allocation7 + $0x8] sm:$0x1] %v128_v32  ;;  %v146_v39 = vadd.f32 %v145_v31, %v143_v37  ;;  %s220_s21 = scalar_lea.vmem %s163_s1, 256  ;;  %p225_p11 = scmp.lt.s32.totalorder %s163_s1, %s163_s1 }
  0x31   :  { %138 = vst [vmem:[#allocation7 + $0x9] sm:$0x1] %v137_v36  ;;  %v155_v40 = vadd.f32 %v154_v35, %v152_v38  ;;  %p221_p10 = scmp.ne.s32.totalorder %s163_s1, %s220_s21  ;;  %p226_p12 = scmp.lt.s32.totalorder %s220_s21, %s220_s21 }
  0x32   :  { %147 = vst [vmem:[#allocation7 + $0xa] sm:$0x1] %v146_v39 }
  0x33   :  { %156 = vst [vmem:[#allocation7 + $0xb] sm:$0x1] %v155_v40  ;;  %p227_p13 = por %p226_p12, %p225_p11 }
  0x35   :  { %p228_p0 = pnand %p227_p13, %p221_p10 }
  0x37   :  { %231 = shalt.err (!%p228_p0)
}
  0x38   :  { %168 = dma.vmem_to_hbm [thread:$0]  %s163_s1, 256, %s286_s2, [#allocation4], %s247_s12, %s247_s12, %s248_s13  }
  0x39   :  { %244 = dma.done.wait [#allocation4], 256  }
  0x3a   :  { %245 = vsyncadd [#allocation4], 4294967040 }
  0x3b   :  { %172 = vsyncpa [#allocation3], 1 }
  0x3c   :  { %173 = vsyncpa [#allocation6], 1 }
  0x3d   :  { %174 = vsyncpa [#allocation4], 1 }

</bundles_post_ra>
